<compile_context>
chip_gen: v7x
topology: tpu7x:2x2x1
jax: 0.10.0
libtpu: 0.0.40
codegen_flags: <defaults>
</compile_context>

<pallas_src>
from functools import partial

import jax
import jax.numpy as jnp
from jax.experimental import pallas as pl
from jax.experimental.pallas import tpu as pltpu


def _cdiv(a, b):
    return -(-a // b)


def _vmem_capacity_bytes():
    """Physical VMEM per TensorCore (128 MiB v5e/v6e, 64 MiB v7x)."""
    try:
        return int(pltpu.get_tpu_info().vmem_capacity_bytes)
    except Exception:
        return 64 * 1024 * 1024  # conservative (v7x-sized) fallback


def _downsample_conv_kernel(ee_ref, eeh_ref, eo_ref, eoh_ref, oe_ref, oo_ref,
                            w_ref, b_ref, o_ref):
    """One (image, output-row-block) step of the stride-2 3x3 conv.

    ee_ref : (1, TOH, Wo+1, C) even input rows / even input cols
    eeh_ref: (1, 1,   Wo+1, C) one-row halo of ee (row TOH)
    eo_ref : (1, TOH, Wo,   C) even input rows / odd  input cols
    eoh_ref: (1, 1,   Wo,   C) one-row halo of eo
    oe_ref : (1, TOH, Wo+1, C) odd  input rows / even input cols
    oo_ref : (1, TOH, Wo,   C) odd  input rows / odd  input cols
    w_ref  : (9, C, C)  tap t = kh*3 + kw, laid out (cin, cout)
    b_ref  : (1, C)     f32 bias
    o_ref  : (1, TOH, Wo, C)
    """
    _, toh, wo, c = o_ref.shape

    # Append the one-row halo to the even-row slabs (leading-dim concat).
    ee = jnp.concatenate([ee_ref[0], eeh_ref[0]], axis=0)   # (TOH+1, Wo+1, C)
    eo = jnp.concatenate([eo_ref[0], eoh_ref[0]], axis=0)   # (TOH+1, Wo,   C)
    oe = oe_ref[0]                                           # (TOH,   Wo+1, C)
    oo = oo_ref[0]                                           # (TOH,   Wo,   C)

    # tap(kh, kw)[oh, ow, cin] == x_padded[2*oh + kh, 2*ow + kw, cin]
    # All taps are contiguous slices of the four phase slabs.
    taps = (
        ee[0:toh, 0:wo],          # (kh=0, kw=0)
        eo[0:toh, 0:wo],          # (0, 1)
        ee[0:toh, 1:wo + 1],      # (0, 2)
        oe[:, 0:wo],              # (1, 0)
        oo,                       # (1, 1)
        oe[:, 1:wo + 1],          # (1, 2)
        ee[1:toh + 1, 0:wo],      # (2, 0)
        eo[1:toh + 1, 0:wo],      # (2, 1)
        ee[1:toh + 1, 1:wo + 1],  # (2, 2)
    )

    acc = jnp.zeros((toh * wo, c), jnp.float32)
    for t in range(9):                                       # 9 MXU matmuls, f32 acc
        acc = acc + jnp.dot(taps[t].reshape(toh * wo, c), w_ref[t],
                            preferred_element_type=jnp.float32)
    acc = acc + b_ref[...]                                   # (1, C) broadcasts
    o_ref[...] = acc.reshape(1, toh, wo, c).astype(o_ref.dtype)


@partial(jax.jit, static_argnames=("compute_dtype",))
def downsample_nhwc(x_nhwc, weight_oihw, bias, *, compute_dtype=None):
    """Conv2d(C, C, k=3, stride=2, pad=1) on NHWC activations."""
    N, H, W, C = x_nhwc.shape
    Cout, Cin, KH, KW = weight_oihw.shape
    assert (Cout, Cin, KH, KW) == (C, C, 3, 3), "Downsample expects a CxC 3x3 conv"
    Ho, Wo = (H + 1) // 2, (W + 1) // 2                      # PyTorch ceil(H/2), ceil(W/2)

    out_dtype = x_nhwc.dtype
    cdtype = jnp.dtype(compute_dtype) if compute_dtype is not None else jnp.dtype(out_dtype)
    in_isz = cdtype.itemsize
    out_isz = jnp.dtype(out_dtype).itemsize

    # ---- per-generation tile sizing (output rows per grid step) ----
    vmem_cap = _vmem_capacity_bytes()
    block_budget = max(2 << 20, vmem_cap // 8)               # ~16 MiB v5e/v6e, ~8 MiB v7x
    # per output row: 4 phase blocks (double-buffered) + in-kernel halo concats
    # + f32 accumulator + double-buffered output block.
    row_bytes = Wo * C * (10 * in_isz + 4 + 2 * out_isz) + 1
    TOH = max(1, min(Ho, block_budget // row_bytes))
    nblocks = _cdiv(Ho, TOH)
    if N * nblocks < 2 and Ho >= 2:                          # keep both v7x TCs busy
        nblocks = 2
    TOH = _cdiv(Ho, nblocks)                                 # rebalance (minimal padding)

    He = nblocks * TOH + 1                                   # even-row extents (+halo row)
    Hodd = nblocks * TOH                                     # odd-row extents
    Hp_need = 2 * nblocks * TOH + 1                          # padded-input rows required
    pad_bottom = max(0, Hp_need - (H + 1))

    # ---- wrapper layout glue (the only extra HBM pass, ~1.05x input) ----
    xc = x_nhwc.astype(cdtype)
    xp = jnp.pad(xc, ((0, 0), (1, pad_bottom), (1, 1), (0, 0)))
    # Four stride-2 phase views of the padded activation; tap (kh, kw) of the
    # conv is phase(kh%2, kw%2) shifted by (kh//2, kw//2).
    a_ee = xp[:, 0:2 * He - 1:2, 0:2 * Wo + 1:2, :]          # (N, He,   Wo+1, C)
    a_eo = xp[:, 0:2 * He - 1:2, 1:2 * Wo:2, :]              # (N, He,   Wo,   C)
    a_oe = xp[:, 1:2 * Hodd:2, 0:2 * Wo + 1:2, :]            # (N, Hodd, Wo+1, C)
    a_oo = xp[:, 1:2 * Hodd:2, 1:2 * Wo:2, :]                # (N, Hodd, Wo,   C)

    # Weight OIHW -> (kh, kw, cin, cout) -> (9, C, C); bias stays f32.
    w_taps = jnp.transpose(weight_oihw, (2, 3, 1, 0)).reshape(9, C, C).astype(cdtype)
    b2d = bias.reshape(1, C).astype(jnp.float32)

    # ---- specs ----
    def act_spec(w_cols):
        return pl.BlockSpec((1, TOH, w_cols, C), lambda n, i: (n, i, 0, 0))

    def halo_spec(w_cols):
        return pl.BlockSpec((1, 1, w_cols, C), lambda n, i: (n, (i + 1) * TOH, 0, 0))

    in_specs = [
        act_spec(Wo + 1), halo_spec(Wo + 1),                 # even rows / even cols
        act_spec(Wo), halo_spec(Wo),                         # even rows / odd  cols
        act_spec(Wo + 1),                                    # odd rows  / even cols
        act_spec(Wo),                                        # odd rows  / odd  cols
        pl.BlockSpec((9, C, C), lambda n, i: (0, 0, 0)),     # grid-invariant, VMEM resident
        pl.BlockSpec((1, C), lambda n, i: (0, 0)),           # grid-invariant, VMEM resident
    ]
    out_spec = pl.BlockSpec((1, TOH, Wo, C), lambda n, i: (n, i, 0, 0))

    # ---- VMEM limit (headroom below physical capacity, esp. on 64 MiB v7x) ----
    block_bytes = TOH * Wo * C * (10 * in_isz + 4 + 2 * out_isz)
    w_bytes = 9 * C * C * in_isz + C * 4
    vmem_need = block_bytes + w_bytes + (4 << 20)
    vmem_limit = int(min(max(vmem_need, 32 << 20), (vmem_cap * 3) // 4))

    act_bytes = (a_ee.size + a_eo.size + a_oe.size + a_oo.size) * in_isz
    cost = pl.CostEstimate(
        flops=2 * N * Ho * Wo * 9 * C * C,
        transcendentals=0,
        bytes_accessed=int(act_bytes + w_bytes + N * Ho * Wo * C * out_isz),
    )

    out = pl.pallas_call(
        _downsample_conv_kernel,
        out_shape=jax.ShapeDtypeStruct((N, Ho, Wo, C), out_dtype),
        grid_spec=pltpu.PrefetchScalarGridSpec(
            num_scalar_prefetch=0,
            grid=(N, nblocks),
            in_specs=in_specs,
            out_specs=out_spec,
        ),
        compiler_params=pltpu.CompilerParams(
            dimension_semantics=("parallel", "parallel"),
            vmem_limit_bytes=vmem_limit,
        ),
        cost_estimate=cost,
    )(a_ee, a_ee, a_eo, a_eo, a_oe, a_oo, w_taps, b2d)
    return out


@partial(jax.jit, static_argnames=("compute_dtype",))
def downsample(x_nchw, weight_oihw, bias, *, compute_dtype=None):
    """PyTorch-facing NCHW wrapper of Downsample(n_ch).forward."""
    x_nhwc = jnp.transpose(x_nchw, (0, 2, 3, 1))
    y = downsample_nhwc(x_nhwc, weight_oihw, bias, compute_dtype=compute_dtype)
    return jnp.transpose(y, (0, 3, 1, 2))


def _reference(x, weight, bias):
    C = weight.shape[0]
    return jax.lax.conv_general_dilated(
        x, weight, window_strides=(2, 2), padding=((1, 1), (1, 1)),
        dimension_numbers=("NCHW", "OIHW", "NCHW")) + bias.reshape(1, C, 1, 1)


if __name__ == "__main__":
    N, C, H, W = 2, 4, 16, 16
    key = jax.random.PRNGKey(0)
    kx, kw_, kb = jax.random.split(key, 3)

    x = jax.random.normal(kx, (N, C, H, W), dtype=jnp.float32)
    fan_in = C * 3 * 3
    bound = 1.0 / (fan_in ** 0.5)
    weight = jax.random.uniform(kw_, (C, C, 3, 3), jnp.float32, -bound, bound)
    bias = jax.random.uniform(kb, (C,), jnp.float32, -bound, bound)

    # --- exact (f32) path, matches PyTorch semantics ---
    y = jax.block_until_ready(downsample(x, weight, bias))
    assert y.shape == (N, C, H // 2, W // 2), y.shape
    y_ref = _reference(x, weight, bias)
    assert jnp.allclose(y, y_ref, atol=1e-5, rtol=1e-5), \
        float(jnp.max(jnp.abs(y - y_ref)))

    # --- bf16 fast path (f32 accumulation), loose tolerance ---
    y_bf = jax.block_until_ready(downsample(x, weight, bias, compute_dtype=jnp.bfloat16))
    assert y_bf.shape == y_ref.shape
    assert jnp.allclose(y_bf, y_ref, atol=5e-2, rtol=5e-2), \
        float(jnp.max(jnp.abs(y_bf - y_ref)))

    # --- odd spatial size: exercises ceil(H/2), the halo path and the ragged
    #     (masked) last output-row block ---
    N2, C2, H2, W2 = 1, 8, 9, 9
    k2x, k2w, k2b = jax.random.split(jax.random.PRNGKey(1), 3)
    x2 = jax.random.normal(k2x, (N2, C2, H2, W2), dtype=jnp.float32)
    b2 = 1.0 / ((C2 * 9) ** 0.5)
    w2 = jax.random.uniform(k2w, (C2, C2, 3, 3), jnp.float32, -b2, b2)
    bb2 = jax.random.uniform(k2b, (C2,), jnp.float32, -b2, b2)
    y2 = jax.block_until_ready(downsample(x2, w2, bb2))
    y2_ref = _reference(x2, w2, bb2)
    assert y2.shape == ((N2, C2, (H2 + 1) // 2, (W2 + 1) // 2)), y2.shape
    assert jnp.allclose(y2, y2_ref, atol=1e-5, rtol=1e-5), \
        float(jnp.max(jnp.abs(y2 - y2_ref)))

    print("KERNEL_OK")
</pallas_src>

<mosaic_0001>
module attributes {stable_mosaic.version = 11 : i64} {
  func.func @_downsample_conv_kernel(%arg0: i32, %arg1: i32, %arg2: memref<1x8x9x4xf32, #tpu.memory_space<vmem>>, %arg3: memref<1x1x9x4xf32, #tpu.memory_space<vmem>>, %arg4: memref<1x8x8x4xf32, #tpu.memory_space<vmem>>, %arg5: memref<1x1x8x4xf32, #tpu.memory_space<vmem>>, %arg6: memref<1x8x9x4xf32, #tpu.memory_space<vmem>>, %arg7: memref<1x8x8x4xf32, #tpu.memory_space<vmem>>, %arg8: memref<9x4x4xf32, #tpu.memory_space<vmem>>, %arg9: memref<1x4xf32, #tpu.memory_space<vmem>>, %arg10: memref<1x8x8x4xf32, #tpu.memory_space<vmem>>) attributes {dimension_semantics = [#tpu.dimension_semantics<parallel>, #tpu.dimension_semantics<parallel>], iteration_bounds = array<i64: 2, 1>, scalar_prefetch = 0 : i64, scratch_operands = 0 : i64, tpu.core_type = #tpu.core_type<tc>, window_params = [{transform_indices = @transform_0, window_bounds = array<i64: 1, 8, 9, 4>}, {transform_indices = @transform_1, window_bounds = array<i64: 1, 1, 9, 4>}, {transform_indices = @transform_2, window_bounds = array<i64: 1, 8, 8, 4>}, {transform_indices = @transform_3, window_bounds = array<i64: 1, 1, 8, 4>}, {transform_indices = @transform_4, window_bounds = array<i64: 1, 8, 9, 4>}, {transform_indices = @transform_5, window_bounds = array<i64: 1, 8, 8, 4>}, {pipeline_mode = #tpu.pipeline_mode<synchronous>, transform_indices = @transform_6, window_bounds = array<i64: 9, 4, 4>}, {pipeline_mode = #tpu.pipeline_mode<synchronous>, transform_indices = @transform_7, window_bounds = array<i64: 1, 4>}, {transform_indices = @transform_8, window_bounds = array<i64: 1, 8, 8, 4>}]} {
    %c0 = arith.constant 0 : index
    %c0_0 = arith.constant 0 : index
    %c0_1 = arith.constant 0 : index
    %c0_2 = arith.constant 0 : index
    %0 = vector.load %arg2[%c0, %c0_0, %c0_1, %c0_2] : memref<1x8x9x4xf32, #tpu.memory_space<vmem>>, vector<1x8x9x4xf32>
    %1 = vector.shape_cast %0 : vector<1x8x9x4xf32> to vector<8x9x4xf32>
    %c0_3 = arith.constant 0 : index
    %c0_4 = arith.constant 0 : index
    %c0_5 = arith.constant 0 : index
    %c0_6 = arith.constant 0 : index
    %2 = vector.load %arg3[%c0_3, %c0_4, %c0_5, %c0_6] : memref<1x1x9x4xf32, #tpu.memory_space<vmem>>, vector<1x1x9x4xf32>
    %3 = vector.shape_cast %2 : vector<1x1x9x4xf32> to vector<1x9x4xf32>
    %4 = tpu.concatenate %1, %3 in 0 : vector<8x9x4xf32>, vector<1x9x4xf32> -> vector<9x9x4xf32>
    %c0_7 = arith.constant 0 : index
    %c0_8 = arith.constant 0 : index
    %c0_9 = arith.constant 0 : index
    %c0_10 = arith.constant 0 : index
    %5 = vector.load %arg4[%c0_7, %c0_8, %c0_9, %c0_10] : memref<1x8x8x4xf32, #tpu.memory_space<vmem>>, vector<1x8x8x4xf32>
    %6 = vector.shape_cast %5 : vector<1x8x8x4xf32> to vector<8x8x4xf32>
    %c0_11 = arith.constant 0 : index
    %c0_12 = arith.constant 0 : index
    %c0_13 = arith.constant 0 : index
    %c0_14 = arith.constant 0 : index
    %7 = vector.load %arg5[%c0_11, %c0_12, %c0_13, %c0_14] : memref<1x1x8x4xf32, #tpu.memory_space<vmem>>, vector<1x1x8x4xf32>
    %8 = vector.shape_cast %7 : vector<1x1x8x4xf32> to vector<1x8x4xf32>
    %9 = tpu.concatenate %6, %8 in 0 : vector<8x8x4xf32>, vector<1x8x4xf32> -> vector<9x8x4xf32>
    %c0_15 = arith.constant 0 : index
    %c0_16 = arith.constant 0 : index
    %c0_17 = arith.constant 0 : index
    %c0_18 = arith.constant 0 : index
    %10 = vector.load %arg6[%c0_15, %c0_16, %c0_17, %c0_18] : memref<1x8x9x4xf32, #tpu.memory_space<vmem>>, vector<1x8x9x4xf32>
    %11 = vector.shape_cast %10 : vector<1x8x9x4xf32> to vector<8x9x4xf32>
    %c0_19 = arith.constant 0 : index
    %c0_20 = arith.constant 0 : index
    %c0_21 = arith.constant 0 : index
    %c0_22 = arith.constant 0 : index
    %12 = vector.load %arg7[%c0_19, %c0_20, %c0_21, %c0_22] : memref<1x8x8x4xf32, #tpu.memory_space<vmem>>, vector<1x8x8x4xf32>
    %13 = vector.shape_cast %12 : vector<1x8x8x4xf32> to vector<8x8x4xf32>
    %14 = vector.extract_strided_slice %4 {offsets = [0, 0, 0], sizes = [8, 8, 4], strides = [1, 1, 1]} : vector<9x9x4xf32> to vector<8x8x4xf32>
    %15 = vector.extract_strided_slice %9 {offsets = [0, 0, 0], sizes = [8, 8, 4], strides = [1, 1, 1]} : vector<9x8x4xf32> to vector<8x8x4xf32>
    %16 = vector.extract_strided_slice %4 {offsets = [0, 1, 0], sizes = [8, 8, 4], strides = [1, 1, 1]} : vector<9x9x4xf32> to vector<8x8x4xf32>
    %17 = vector.extract_strided_slice %11 {offsets = [0, 0, 0], sizes = [8, 8, 4], strides = [1, 1, 1]} : vector<8x9x4xf32> to vector<8x8x4xf32>
    %18 = vector.extract_strided_slice %11 {offsets = [0, 1, 0], sizes = [8, 8, 4], strides = [1, 1, 1]} : vector<8x9x4xf32> to vector<8x8x4xf32>
    %19 = vector.extract_strided_slice %4 {offsets = [1, 0, 0], sizes = [8, 8, 4], strides = [1, 1, 1]} : vector<9x9x4xf32> to vector<8x8x4xf32>
    %20 = vector.extract_strided_slice %9 {offsets = [1, 0, 0], sizes = [8, 8, 4], strides = [1, 1, 1]} : vector<9x8x4xf32> to vector<8x8x4xf32>
    %21 = vector.extract_strided_slice %4 {offsets = [1, 1, 0], sizes = [8, 8, 4], strides = [1, 1, 1]} : vector<9x9x4xf32> to vector<8x8x4xf32>
    %cst = arith.constant 0.000000e+00 : f32
    %22 = vector.broadcast %cst : f32 to vector<64x4xf32>
    %23 = vector.shape_cast %14 : vector<8x8x4xf32> to vector<64x4xf32>
    %c0_23 = arith.constant 0 : index
    %c0_24 = arith.constant 0 : index
    %c0_25 = arith.constant 0 : index
    %24 = vector.load %arg8[%c0_23, %c0_24, %c0_25] : memref<9x4x4xf32, #tpu.memory_space<vmem>>, vector<1x4x4xf32>
    %25 = vector.shape_cast %24 : vector<1x4x4xf32> to vector<4x4xf32>
    %cst_26 = arith.constant dense<0.000000e+00> : vector<64x4xf32>
    %26 = tpu.matmul %23, %25, %cst_26 {dimension_numbers = #tpu.dot_dimension_numbers<[1], [0], [0], [1], [0, 0, 1, 1], [], []>} : vector<64x4xf32>, vector<4x4xf32>, vector<64x4xf32> -> vector<64x4xf32>
    %27 = arith.addf %22, %26 : vector<64x4xf32>
    %28 = vector.shape_cast %15 : vector<8x8x4xf32> to vector<64x4xf32>
    %c1 = arith.constant 1 : index
    %c0_27 = arith.constant 0 : index
    %c0_28 = arith.constant 0 : index
    %29 = vector.load %arg8[%c1, %c0_27, %c0_28] : memref<9x4x4xf32, #tpu.memory_space<vmem>>, vector<1x4x4xf32>
    %30 = vector.shape_cast %29 : vector<1x4x4xf32> to vector<4x4xf32>
    %cst_29 = arith.constant dense<0.000000e+00> : vector<64x4xf32>
    %31 = tpu.matmul %28, %30, %cst_29 {dimension_numbers = #tpu.dot_dimension_numbers<[1], [0], [0], [1], [0, 0, 1, 1], [], []>} : vector<64x4xf32>, vector<4x4xf32>, vector<64x4xf32> -> vector<64x4xf32>
    %32 = arith.addf %27, %31 : vector<64x4xf32>
    %33 = vector.shape_cast %16 : vector<8x8x4xf32> to vector<64x4xf32>
    %c2 = arith.constant 2 : index
    %c0_30 = arith.constant 0 : index
    %c0_31 = arith.constant 0 : index
    %34 = vector.load %arg8[%c2, %c0_30, %c0_31] : memref<9x4x4xf32, #tpu.memory_space<vmem>>, vector<1x4x4xf32>
    %35 = vector.shape_cast %34 : vector<1x4x4xf32> to vector<4x4xf32>
    %cst_32 = arith.constant dense<0.000000e+00> : vector<64x4xf32>
    %36 = tpu.matmul %33, %35, %cst_32 {dimension_numbers = #tpu.dot_dimension_numbers<[1], [0], [0], [1], [0, 0, 1, 1], [], []>} : vector<64x4xf32>, vector<4x4xf32>, vector<64x4xf32> -> vector<64x4xf32>
    %37 = arith.addf %32, %36 : vector<64x4xf32>
    %38 = vector.shape_cast %17 : vector<8x8x4xf32> to vector<64x4xf32>
    %c3 = arith.constant 3 : index
    %c0_33 = arith.constant 0 : index
    %c0_34 = arith.constant 0 : index
    %39 = vector.load %arg8[%c3, %c0_33, %c0_34] : memref<9x4x4xf32, #tpu.memory_space<vmem>>, vector<1x4x4xf32>
    %40 = vector.shape_cast %39 : vector<1x4x4xf32> to vector<4x4xf32>
    %cst_35 = arith.constant dense<0.000000e+00> : vector<64x4xf32>
    %41 = tpu.matmul %38, %40, %cst_35 {dimension_numbers = #tpu.dot_dimension_numbers<[1], [0], [0], [1], [0, 0, 1, 1], [], []>} : vector<64x4xf32>, vector<4x4xf32>, vector<64x4xf32> -> vector<64x4xf32>
    %42 = arith.addf %37, %41 : vector<64x4xf32>
    %43 = vector.shape_cast %13 : vector<8x8x4xf32> to vector<64x4xf32>
    %c4 = arith.constant 4 : index
    %c0_36 = arith.constant 0 : index
    %c0_37 = arith.constant 0 : index
    %44 = vector.load %arg8[%c4, %c0_36, %c0_37] : memref<9x4x4xf32, #tpu.memory_space<vmem>>, vector<1x4x4xf32>
    %45 = vector.shape_cast %44 : vector<1x4x4xf32> to vector<4x4xf32>
    %cst_38 = arith.constant dense<0.000000e+00> : vector<64x4xf32>
    %46 = tpu.matmul %43, %45, %cst_38 {dimension_numbers = #tpu.dot_dimension_numbers<[1], [0], [0], [1], [0, 0, 1, 1], [], []>} : vector<64x4xf32>, vector<4x4xf32>, vector<64x4xf32> -> vector<64x4xf32>
    %47 = arith.addf %42, %46 : vector<64x4xf32>
    %48 = vector.shape_cast %18 : vector<8x8x4xf32> to vector<64x4xf32>
    %c5 = arith.constant 5 : index
    %c0_39 = arith.constant 0 : index
    %c0_40 = arith.constant 0 : index
    %49 = vector.load %arg8[%c5, %c0_39, %c0_40] : memref<9x4x4xf32, #tpu.memory_space<vmem>>, vector<1x4x4xf32>
    %50 = vector.shape_cast %49 : vector<1x4x4xf32> to vector<4x4xf32>
    %cst_41 = arith.constant dense<0.000000e+00> : vector<64x4xf32>
    %51 = tpu.matmul %48, %50, %cst_41 {dimension_numbers = #tpu.dot_dimension_numbers<[1], [0], [0], [1], [0, 0, 1, 1], [], []>} : vector<64x4xf32>, vector<4x4xf32>, vector<64x4xf32> -> vector<64x4xf32>
    %52 = arith.addf %47, %51 : vector<64x4xf32>
    %53 = vector.shape_cast %19 : vector<8x8x4xf32> to vector<64x4xf32>
    %c6 = arith.constant 6 : index
    %c0_42 = arith.constant 0 : index
    %c0_43 = arith.constant 0 : index
    %54 = vector.load %arg8[%c6, %c0_42, %c0_43] : memref<9x4x4xf32, #tpu.memory_space<vmem>>, vector<1x4x4xf32>
    %55 = vector.shape_cast %54 : vector<1x4x4xf32> to vector<4x4xf32>
    %cst_44 = arith.constant dense<0.000000e+00> : vector<64x4xf32>
    %56 = tpu.matmul %53, %55, %cst_44 {dimension_numbers = #tpu.dot_dimension_numbers<[1], [0], [0], [1], [0, 0, 1, 1], [], []>} : vector<64x4xf32>, vector<4x4xf32>, vector<64x4xf32> -> vector<64x4xf32>
    %57 = arith.addf %52, %56 : vector<64x4xf32>
    %58 = vector.shape_cast %20 : vector<8x8x4xf32> to vector<64x4xf32>
    %c7 = arith.constant 7 : index
    %c0_45 = arith.constant 0 : index
    %c0_46 = arith.constant 0 : index
    %59 = vector.load %arg8[%c7, %c0_45, %c0_46] : memref<9x4x4xf32, #tpu.memory_space<vmem>>, vector<1x4x4xf32>
    %60 = vector.shape_cast %59 : vector<1x4x4xf32> to vector<4x4xf32>
    %cst_47 = arith.constant dense<0.000000e+00> : vector<64x4xf32>
    %61 = tpu.matmul %58, %60, %cst_47 {dimension_numbers = #tpu.dot_dimension_numbers<[1], [0], [0], [1], [0, 0, 1, 1], [], []>} : vector<64x4xf32>, vector<4x4xf32>, vector<64x4xf32> -> vector<64x4xf32>
    %62 = arith.addf %57, %61 : vector<64x4xf32>
    %63 = vector.shape_cast %21 : vector<8x8x4xf32> to vector<64x4xf32>
    %c8 = arith.constant 8 : index
    %c0_48 = arith.constant 0 : index
    %c0_49 = arith.constant 0 : index
    %64 = vector.load %arg8[%c8, %c0_48, %c0_49] : memref<9x4x4xf32, #tpu.memory_space<vmem>>, vector<1x4x4xf32>
    %65 = vector.shape_cast %64 : vector<1x4x4xf32> to vector<4x4xf32>
    %cst_50 = arith.constant dense<0.000000e+00> : vector<64x4xf32>
    %66 = tpu.matmul %63, %65, %cst_50 {dimension_numbers = #tpu.dot_dimension_numbers<[1], [0], [0], [1], [0, 0, 1, 1], [], []>} : vector<64x4xf32>, vector<4x4xf32>, vector<64x4xf32> -> vector<64x4xf32>
    %67 = arith.addf %62, %66 : vector<64x4xf32>
    %c0_51 = arith.constant 0 : index
    %c0_52 = arith.constant 0 : index
    %68 = vector.load %arg9[%c0_51, %c0_52] : memref<1x4xf32, #tpu.memory_space<vmem>>, vector<1x4xf32>
    %69 = vector.broadcast %68 : vector<1x4xf32> to vector<64x4xf32>
    %70 = arith.addf %67, %69 : vector<64x4xf32>
    %71 = vector.shape_cast %70 : vector<64x4xf32> to vector<1x8x8x4xf32>
    %c0_53 = arith.constant 0 : index
    %c0_54 = arith.constant 0 : index
    %c0_55 = arith.constant 0 : index
    %c0_56 = arith.constant 0 : index
    %72 = vector.load %arg10[%c0_53, %c0_54, %c0_55, %c0_56] : memref<1x8x8x4xf32, #tpu.memory_space<vmem>>, vector<1x8x8x4xf32>
    tpu.vector_store %arg10[%c0_53, %c0_54, %c0_55, %c0_56], %71 {strides = array<i32>} : memref<1x8x8x4xf32, #tpu.memory_space<vmem>>, vector<1x8x8x4xf32>,
    return
  }
  func.func @transform_0(%arg0: i32, %arg1: i32) -> (i32, i32, i32, i32) {
    %c0_i32 = arith.constant 0 : i32
    %c0_i32_0 = arith.constant 0 : i32
    %c0_i32_1 = arith.constant 0 : i32
    return %arg0, %arg1, %c0_i32, %c0_i32_0 : i32, i32, i32, i32
  }
  func.func @transform_1(%arg0: i32, %arg1: i32) -> (i32, i32, i32, i32) {
    %c1_i32 = arith.constant 1 : i32
    %0 = arith.addi %arg1, %c1_i32 : i32
    %c8_i32 = arith.constant 8 : i32
    %1 = arith.muli %0, %c8_i32 : i32
    %c0_i32 = arith.constant 0 : i32
    %c0_i32_0 = arith.constant 0 : i32
    %c0_i32_1 = arith.constant 0 : i32
    return %arg0, %1, %c0_i32, %c0_i32_0 : i32, i32, i32, i32
  }
  func.func @transform_2(%arg0: i32, %arg1: i32) -> (i32, i32, i32, i32) {
    %c0_i32 = arith.constant 0 : i32
    %c0_i32_0 = arith.constant 0 : i32
    %c0_i32_1 = arith.constant 0 : i32
    return %arg0, %arg1, %c0_i32, %c0_i32_0 : i32, i32, i32, i32
  }
  func.func @transform_3(%arg0: i32, %arg1: i32) -> (i32, i32, i32, i32) {
    %c1_i32 = arith.constant 1 : i32
    %0 = arith.addi %arg1, %c1_i32 : i32
    %c8_i32 = arith.constant 8 : i32
    %1 = arith.muli %0, %c8_i32 : i32
    %c0_i32 = arith.constant 0 : i32
    %c0_i32_0 = arith.constant 0 : i32
    %c0_i32_1 = arith.constant 0 : i32
    return %arg0, %1, %c0_i32, %c0_i32_0 : i32, i32, i32, i32
  }
  func.func @transform_4(%arg0: i32, %arg1: i32) -> (i32, i32, i32, i32) {
    %c0_i32 = arith.constant 0 : i32
    %c0_i32_0 = arith.constant 0 : i32
    %c0_i32_1 = arith.constant 0 : i32
    return %arg0, %arg1, %c0_i32, %c0_i32_0 : i32, i32, i32, i32
  }
  func.func @transform_5(%arg0: i32, %arg1: i32) -> (i32, i32, i32, i32) {
    %c0_i32 = arith.constant 0 : i32
    %c0_i32_0 = arith.constant 0 : i32
    %c0_i32_1 = arith.constant 0 : i32
    return %arg0, %arg1, %c0_i32, %c0_i32_0 : i32, i32, i32, i32
  }
  func.func @transform_6(%arg0: i32, %arg1: i32) -> (i32, i32, i32) {
    %c0_i32 = arith.constant 0 : i32
    %c0_i32_0 = arith.constant 0 : i32
    %c0_i32_1 = arith.constant 0 : i32
    %c0_i32_2 = arith.constant 0 : i32
    return %c0_i32, %c0_i32_0, %c0_i32_1 : i32, i32, i32
  }
  func.func @transform_7(%arg0: i32, %arg1: i32) -> (i32, i32) {
    %c0_i32 = arith.constant 0 : i32
    %c0_i32_0 = arith.constant 0 : i32
    %c0_i32_1 = arith.constant 0 : i32
    return %c0_i32, %c0_i32_0 : i32, i32
  }
  func.func @transform_8(%arg0: i32, %arg1: i32) -> (i32, i32, i32, i32) {
    %c0_i32 = arith.constant 0 : i32
    %c0_i32_0 = arith.constant 0 : i32
    %c0_i32_1 = arith.constant 0 : i32
    return %arg0, %arg1, %c0_i32, %c0_i32_0 : i32, i32, i32, i32
  }
}

</mosaic_0001>

<bundles_post_ra>
// kernel: downsample_nhwc.1
= control target key start
LH: loop header
LB: loop body
LE: loop exit
PB: predicated region body
PF: predicated region fallthrough
CT: control target
= control target key end

     0   :  { %s2595_s27 = smov 0   ;;  %s2597_s28 = smov 0   ;;  %s2948_s0 = inlined_call_operand.vmem [shape: f32[2,9,9,4], index: 0, kind: input, shape index: {}, may-alias: {0,1}]   ;;  %s2949_s1 = inlined_call_operand.vmem [shape: f32[2,9,9,4], index: 1, kind: input, shape index: {}, may-alias: {0,1}]   ;;  %s2950_s2 = inlined_call_operand.vmem [shape: f32[2,9,8,4], index: 2, kind: input, shape index: {}, may-alias: {2,3}]   ;;  %s2951_s3 = inlined_call_operand.vmem [shape: f32[2,9,8,4], index: 3, kind: input, shape index: {}, may-alias: {2,3}]   ;;  %s2952_s4 = inlined_call_operand.vmem [shape: f32[2,8,9,4], index: 4, kind: input, shape index: {}]   ;;  %s2953_s5 = inlined_call_operand.vmem [shape: f32[2,8,8,4], index: 5, kind: input, shape index: {}]   ;;  %s2954_s6 = inlined_call_operand.vmem [shape: f32[9,4,4], index: 6, kind: input, shape index: {}]   ;;  %s2955_s7 = inlined_call_operand.vmem [shape: f32[1,4], index: 7, kind: input, shape index: {}]   ;;  %s2956_s8 = inlined_call_operand.vmem [shape: f32[2,8,8,4], index: 8, kind: output, shape index: {}]  }
   0x1   :  { %s2599_s29 = smov 0  }
   0x2 LB: > { %s30_s30 = sadd.s32 1, %s2544_s28  ;;  %p2113_p0 = scmp.ge.s32.totalorder %s2548_s29, 1  ;;  %s2548_s29 = sphi %s2599_s29, %s18_s29   ;;  %s2544_s28 = sphi %s2597_s28, %s2958_s28   ;;  %s2540_s27 = sphi %s2595_s27, %s2957_s27  }
   0x3   : > { %p32_p1 = scmp.ge.s32.totalorder %s30_s30, 2  ;;  %p401_p2 = scmp.lt.s32.totalorder %s2548_s29, 3 }
   0x5   : > { %s2960_s30 = smov (%p32_p1, %s30_s30), 0  ;;  %p402_p3 = pnand %p2113_p0, %p401_p2 }
   0x6   : > { %v2124_v0 = vld [vmem:[%s2954_s6 + $0x4] sm:$0xf] (!%p402_p3)  ;;  %vm676_vm0 = vcmask (!%p402_p3), 1043456   ;;  %v2619_v1 = vld [vmem:[%s2954_s6 + $0x10] sm:$0xf] (!%p402_p3)  ;;  %p508_p4 = scmp.lt.s32.totalorder (!%p402_p3), %s2540_s27, 1 }
   0x7   : > { %405 = sbr.rel (%p402_p3) target bundleno = 307 (0x133), region = 52  ;;  %2304 = vmatprep.subr.msk.mxu1 (!%p402_p3), %vm676_vm0, %v2124_v0  ;;  %2360 = vmatprep.subr.msk.mxu0 (!%p402_p3), %vm676_vm0, %v2619_v1  ;;  %v648_v2 = vld [vmem:[%s2954_s6] sm:$0xf] (!%p402_p3)  ;;  %v2173_v3 = vld [vmem:[%s2954_s6 + $0x14] sm:$0xf] (!%p402_p3)  ;;  %vm651_vm1 = vcmask (!%p402_p3), 31744  }
   0x8   : > { %2305 = vmatpush3.msk.msra.mxu1 (!%p402_p3), %vm676_vm0, %v2124_v0  ;;  %2361 = vmatpush3.msk.msra.mxu0 (!%p402_p3), %vm676_vm0, %v2619_v1  ;;  %v2183_v12 = vld [vmem:[%s2954_s6 + $0x18] sm:$0xf] (!%p402_p3)  ;;  %vm925_vm2 = vcmask (!%p402_p3), 1046528   ;;  %v2696_v22 = vld [vmem:[%s2954_s6 + $0x8] sm:$0xf] (!%p402_p3) }
   0x9   : > { %2318 = vmatprep.subr.msk.mxu1 (!%p402_p3), %vm676_vm0, %v648_v2  ;;  %2374 = vmatprep.subr.msk.mxu0 (!%p402_p3), %vm676_vm0, %v2173_v3  ;;  %v2193_v44 = vld [vmem:[%s2954_s6 + $0x1c] sm:$0xf] (!%p402_p3)  ;;  %v2153_v61 = vld [vmem:[%s2954_s6 + $0xc] sm:$0xf] (!%p402_p3) }
   0xe   : > { %s2962_s27 = smov (!%p508_p4, %s2540_s27), 1 }
   0xf   : > { %s2220_s17 = sshll.u32 %s2962_s27, 7  ;;  %s2221_s21 = sshll.u32 %s2962_s27, 6 }
  0x10   : > { %s2641_s20 = scalar_lea.vmem %s2952_s4, %s2220_s17  ;;  %s2498_s22 = smul.u32 72, %s2962_s27 }
  0x11   : > { %v2644_v4 = vld [vmem:[%s2641_s20] sm:$0xff]  ;;  %v625_v5 = vld [vmem:[%s2641_s20 + $0x8] sm:$0x1]  ;;  %s2654_s25 = scalar_lea.vmem %s2953_s5, %s2221_s21  ;;  %v2657_v6 = vld [vmem:[%s2641_s20 + $0x10] sm:$0xff]  ;;  %s2496_s15 = smul.u32 144, %s2962_s27 }
  0x12   : > { %v640_v7 = vld [vmem:[%s2654_s25] sm:$0xff]  ;;  %s2665_s10 = scalar_lea.vmem %s2950_s2, %s2498_s22  ;;  %v641_v8 = vld [vmem:[%s2654_s25 + $0x8] sm:$0xff]  ;;  %v1376_v9 = vrot.slane %v2644_v4, 1  ;;  %v1377_v10 = vrot.slane %v625_v5, 1  ;;  %v627_v11 = vld [vmem:[%s2641_s20 + $0x18] sm:$0x1] }
  0x13   : > { %2362 = vmatprep.mubr.msk.f32.mxu0 %vm651_vm1, %v640_v7  ;;  %v615_v13 = vld [vmem:[%s2665_s10] sm:$0xff]  ;;  %v2676_v14 = vld [vmem:[%s2665_s10 + $0x8] sm:$0xff]  ;;  %v642_v15 = vld [vmem:[%s2654_s25 + $0x10] sm:$0xff]  ;;  %v1379_v20 = vrot.slane %v2657_v6, 1  ;;  %v1380_v21 = vrot.slane %v627_v11, 1  ;;  %s2751_s18 = scalar_lea.vmem %s2948_s0, %s2496_s15  ;;  %s2219_s14 = sadd.s32 64, %s2498_s22 }
  0x14   : > { %2306 = vmatprep.mubr.msk.f32.mxu1 %vm651_vm1, %v615_v13  ;;  %2363 = vmatmul.mubr.msk.f32.vlgmr.msra.gmra.mrb[0].mxu0 %vm651_vm1, %v641_v8  ;;  %v2682_v16 = vld [vmem:[%s2665_s10 + $0x10] sm:$0xff]  ;;  %v2685_v17 = vld [vmem:[%s2641_s20 + $0x20] sm:$0xff]  ;;  %v629_v18 = vld [vmem:[%s2641_s20 + $0x28] sm:$0x1]  ;;  %v1378_v24 = vsel %vm925_vm2, %v1376_v9, %v1377_v10  ;;  %s563_s17 = scalar_lea.vmem %s2951_s3, %s2219_s14 }
  0x15   : > { %2307 = vmatmul.mubr.msk.f32.vlgmr.msra.gmra.mrb[0].mxu1 %vm651_vm1, %v2676_v14  ;;  %2375 = vmatpush3.msk.msra.mxu0 %vm676_vm0, %v2173_v3  ;;  %v643_v19 = vld [vmem:[%s2654_s25 + $0x18] sm:$0xff]  ;;  %v2705_v25 = vld [vmem:[%s2641_s20 + $0x30] sm:$0xff]  ;;  %v2711_v27 = vld [vmem:[%s2665_s10 + $0x20] sm:$0xff]  ;;  %v1382_v28 = vrot.slane %v2685_v17, 1  ;;  %v1383_v29 = vrot.slane %v629_v18, 1  ;;  %v1381_v32 = vsel %vm925_vm2, %v1379_v20, %v1380_v21 }
  0x16   : > { %2319 = vmatpush3.msk.msra.mxu1 %vm676_vm0, %v648_v2  ;;  %2365 = vmatprep.mubr.msk.f32.mxu0 %vm651_vm1, %v642_v15  ;;  %v2701_v23 = vld [vmem:[%s2665_s10 + $0x18] sm:$0xff]  ;;  %v2716_v30 = vld [vmem:[%s2641_s20 + $0x40] sm:$0xff]  ;;  %v633_v31 = vld [vmem:[%s2641_s20 + $0x48] sm:$0x1]  ;;  %v1385_v33 = vrot.slane %v2705_v25, 1 }
  0x17   : > { %v631_v26 = vld [vmem:[%s2641_s20 + $0x38] sm:$0x1]  ;;  %2309 = vmatprep.mubr.msk.f32.mxu1 %vm651_vm1, %v2682_v16  ;;  %2388 = vmatprep.subr.msk.mxu0 %vm676_vm0, %v2183_v12  ;;  %v2731_v35 = vld [vmem:[%s2665_s10 + $0x28] sm:$0xff]  ;;  %v1388_v36 = vrot.slane %v2716_v30, 1  ;;  %v1389_v37 = vrot.slane %v633_v31, 1  ;;  %v2735_v38 = vld [vmem:[%s2641_s20 + $0x50] sm:$0xff]  ;;  %v1384_v40 = vsel %vm925_vm2, %v1382_v28, %v1383_v29 }
  0x18   : > { %2366 = vmatmul.mubr.msk.f32.gmra.mrb[2].mxu0 %vm651_vm1, %v643_v19  ;;  %2332 = vmatprep.subr.msk.mxu1 %vm676_vm0, %v2696_v22  ;;  %v1386_v34 = vrot.slane %v631_v26, 1  ;;  %v635_v39 = vld [vmem:[%s2641_s20 + $0x58] sm:$0x1]  ;;  %v2740_v41 = vld [vmem:[%s2665_s10 + $0x30] sm:$0xff]  ;;  %v2743_v42 = vld [vmem:[%s2641_s20 + $0x60] sm:$0xff]  ;;  %v1391_v46 = vrot.slane %v2735_v38, 1 }
  0x19   : > { %2310 = vmatmul.mubr.msk.f32.gmra.mrb[2].mxu1 %vm651_vm1, %v2701_v23  ;;  %2376 = vmatprep.mubr.msk.f32.mxu0 %vm651_vm1, %v1378_v24  ;;  %v637_v43 = vld [vmem:[%s2641_s20 + $0x68] sm:$0x1]  ;;  %v1392_v47 = vrot.slane %v635_v39, 1  ;;  %v2766_v48 = vld [vmem:[%s2665_s10 + $0x38] sm:$0xff]  ;;  %v1390_v49 = vsel %vm925_vm2, %v1388_v36, %v1389_v37  ;;  %v1394_v50 = vrot.slane %v2743_v42, 1  ;;  %v2771_v52 = vld [vmem:[%s2641_s20 + $0x70] sm:$0xff] }
  0x1a   : > { %2312 = vmatprep.mubr.msk.f32.mxu1 %vm651_vm1, %v2711_v27  ;;  %v1387_v45 = vsel %vm925_vm2, %v1385_v33, %v1386_v34  ;;  %v1395_v51 = vrot.slane %v637_v43, 1  ;;  %v639_v53 = vld [vmem:[%s2641_s20 + $0x78] sm:$0x1]  ;;  %v597_v54 = vld [vmem:[%s2751_s18] sm:$0xff]  ;;  %v1397_v56 = vrot.slane %v2771_v52, 1  ;;  %v599_v58 = vld [vmem:[%s2751_s18 + $0x10] sm:$0xff] }
  0x1b   : > { %v1393_v55 = vsel %vm925_vm2, %v1391_v46, %v1392_v47  ;;  %v1398_v57 = vrot.slane %v639_v53, 1  ;;  %v601_v60 = vld [vmem:[%s2751_s18 + $0x20] sm:$0xff]  ;;  %v603_v63 = vld [vmem:[%s2751_s18 + $0x30] sm:$0xff]  ;;  %v598_v2 = vld [vmem:[%s2751_s18 + $0x8] sm:$0x1]  ;;  %v926_v5 = vrot.slane %v597_v54, 1 }
  0x1c   : > { %2377 = vmatmul.mubr.msk.f32.vlgmr.msra.gmra.mrb[0].mxu0 %vm651_vm1, %v1381_v32  ;;  %v1396_v59 = vsel %vm925_vm2, %v1394_v50, %v1395_v51  ;;  %v605_v0 = vld [vmem:[%s2751_s18 + $0x40] sm:$0xff]  ;;  %v607_v3 = vld [vmem:[%s2751_s18 + $0x50] sm:$0xff]  ;;  %v927_v8 = vrot.slane %v598_v2, 1  ;;  %v600_v9 = vld [vmem:[%s2751_s18 + $0x18] sm:$0x1]  ;;  %v932_v18 = vrot.slane %v601_v60, 1 }
  0x1d   : > { %2313 = vmatmul.mubr.msk.f32.gmra.mrb[4].mxu1 %vm651_vm1, %v2731_v35  ;;  %2389 = vmatpush3.msk.msra.mxu0 %vm676_vm0, %v2183_v12  ;;  %v1399_v62 = vsel %vm925_vm2, %v1397_v56, %v1398_v57  ;;  %v609_v7 = vld [vmem:[%s2751_s18 + $0x60] sm:$0xff]  ;;  %v602_v10 = vld [vmem:[%s2751_s18 + $0x28] sm:$0x1]  ;;  %v929_v12 = vrot.slane %v599_v58, 1  ;;  %v611_v13 = vld [vmem:[%s2751_s18 + $0x70] sm:$0xff]  ;;  %v930_v15 = vrot.slane %v600_v9, 1 }
  0x1e   : > { %2379 = vmatprep.mubr.msk.f32.mxu0 %vm651_vm1, %v1384_v40  ;;  %2315 = vmatprep.mubr.msk.f32.mxu1 %vm651_vm1, %v2740_v41  ;;  %v2203_v11 = vld [vmem:[%s2954_s6 + $0x20] sm:$0xf]  ;;  %v928_v19 = vsel %vm925_vm2, %v926_v5, %v927_v8  ;;  %v933_v20 = vrot.slane %v602_v10, 1  ;;  %s2217_s10 = sadd.s32 128, %s2496_s15  ;;  %v604_v21 = vld [vmem:[%s2751_s18 + $0x38] sm:$0x1] }
  0x1f   : > { %2402 = vmatprep.subr.msk.mxu0 %vm676_vm0, %v2193_v44  ;;  %v935_v24 = vrot.slane %v603_v63, 1  ;;  %v931_v26 = vsel %vm925_vm2, %v929_v12, %v930_v15  ;;  %s2831_s13 = scalar_lea.vmem %s2949_s1, %s2217_s10  ;;  %v936_v28 = vrot.slane %v604_v21, 1  ;;  %v938_v29 = vrot.slane %v605_v0, 1  ;;  %v608_v33 = vld [vmem:[%s2751_s18 + $0x58] sm:$0x1] }
  0x20   : > { %2380 = vmatmul.mubr.msk.f32.gmra.mrb[2].mxu0 %vm651_vm1, %v1387_v45  ;;  %v934_v31 = vsel %vm925_vm2, %v932_v18, %v933_v20  ;;  %v610_v34 = vld [vmem:[%s2751_s18 + $0x68] sm:$0x1]  ;;  %v613_v36 = vld [vmem:[%s2831_s13] sm:$0xff]  ;;  %v941_v37 = vrot.slane %v607_v3, 1  ;;  %v942_v40 = vrot.slane %v608_v33, 1  ;;  %v944_v43 = vrot.slane %v609_v7, 1 }
  0x21   : > { %2316 = vmatmul.mubr.msk.f32.gmra.mrb[6].mxu1 %vm651_vm1, %v2766_v48  ;;  %2382 = vmatprep.mubr.msk.f32.mxu0 %vm651_vm1, %v1390_v49  ;;  %v937_v39 = vsel %vm925_vm2, %v935_v24, %v936_v28  ;;  %v945_v45 = vrot.slane %v610_v34, 1  ;;  %v612_v46 = vld [vmem:[%s2751_s18 + $0x78] sm:$0x1]  ;;  %v947_v47 = vrot.slane %v611_v13, 1 }
  0x22   : > { %2320 = vmatprep.mubr.msk.f32.mxu1 %vm651_vm1, %v597_v54  ;;  %v943_v49 = vsel %vm925_vm2, %v941_v37, %v942_v40  ;;  %v948_v50 = vrot.slane %v612_v46, 1 }
  0x23   : > { %v946_v51 = vsel %vm925_vm2, %v944_v43, %v945_v45 }
  0x24   : > { %2383 = vmatmul.mubr.msk.f32.gmra.mrb[4].mxu0 %vm651_vm1, %v1393_v55 }
  0x25   : > { %2321 = vmatmul.mubr.msk.f32.vlgmr.msra.gmra.mrb[0].mxu1 %vm651_vm1, %v599_v58  ;;  %2385 = vmatprep.mubr.msk.f32.mxu0 %vm651_vm1, %v1396_v59 }
  0x26   : > { %2333 = vmatpush3.msk.msra.mxu1 %vm676_vm0, %v2696_v22  ;;  %2323 = vmatprep.mubr.msk.f32.mxu1 %vm651_vm1, %v601_v60  ;;  %v606_v22 = vld [vmem:[%s2751_s18 + $0x48] sm:$0x1] }
  0x27   : > { %2346 = vmatprep.subr.msk.mxu1 %vm676_vm0, %v2153_v61  ;;  %v939_v32 = vrot.slane %v606_v22, 1 }
  0x28   : > { %2386 = vmatmul.mubr.msk.f32.gmra.mrb[6].mxu0 %vm651_vm1, %v1399_v62 }
  0x29   : > { %2324 = vmatmul.mubr.msk.f32.gmra.mrb[2].mxu1 %vm651_vm1, %v603_v63  ;;  %2390 = vmatprep.mubr.msk.f32.mxu0 %vm651_vm1, %v599_v58 }
  0x2a   : > { %2326 = vmatprep.mubr.msk.f32.mxu1 %vm651_vm1, %v605_v0 }
  0x2c   : > { %2391 = vmatmul.mubr.msk.f32.vlgmr.msra.gmra.mrb[0].mxu0 %vm651_vm1, %v601_v60 }
  0x2d   : > { %2327 = vmatmul.mubr.msk.f32.gmra.mrb[4].mxu1 %vm651_vm1, %v607_v3  ;;  %2403 = vmatpush3.msk.msra.mxu0 %vm676_vm0, %v2193_v44  ;;  %v940_v44 = vsel %vm925_vm2, %v938_v29, %v939_v32 }
  0x2e   : > { %2393 = vmatprep.mubr.msk.f32.mxu0 %vm651_vm1, %v603_v63  ;;  %2329 = vmatprep.mubr.msk.f32.mxu1 %vm651_vm1, %v609_v7 }
  0x2f   : > { %2416 = vmatprep.subr.msk.mxu0 %vm676_vm0, %v2203_v11 }
  0x30   : > { %2394 = vmatmul.mubr.msk.f32.gmra.mrb[2].mxu0 %vm651_vm1, %v605_v0 }
  0x31   : > { %2330 = vmatmul.mubr.msk.f32.gmra.mrb[6].mxu1 %vm651_vm1, %v611_v13  ;;  %2396 = vmatprep.mubr.msk.f32.mxu0 %vm651_vm1, %v607_v3 }
  0x32   : > { %2334 = vmatprep.mubr.msk.f32.mxu1 %vm651_vm1, %v928_v19 }
  0x34   : > { %2397 = vmatmul.mubr.msk.f32.gmra.mrb[4].mxu0 %vm651_vm1, %v609_v7 }
  0x35   : > { %2335 = vmatmul.mubr.msk.f32.vlgmr.msra.gmra.mrb[0].mxu1 %vm651_vm1, %v931_v26  ;;  %2399 = vmatprep.mubr.msk.f32.mxu0 %vm651_vm1, %v611_v13 }
  0x36   : > { %2347 = vmatpush3.msk.msra.mxu1 %vm676_vm0, %v2153_v61  ;;  %2337 = vmatprep.mubr.msk.f32.mxu1 %vm651_vm1, %v934_v31 }
  0x37   : > { %2430 = vmatprep.subr.msk.mxu1 %vm676_vm0, %v2619_v1 }
  0x38   : > { %2400 = vmatmul.mubr.msk.f32.gmra.mrb[6].mxu0 %vm651_vm1, %v613_v36 }
  0x39   : > { %2338 = vmatmul.mubr.msk.f32.gmra.mrb[2].mxu1 %vm651_vm1, %v937_v39  ;;  %2404 = vmatprep.mubr.msk.f32.mxu0 %vm651_vm1, %v2676_v14  ;;  %v949_v14 = vsel %vm925_vm2, %v947_v47, %v948_v50 }
  0x3a   : > { %2340 = vmatprep.mubr.msk.f32.mxu1 %vm651_vm1, %v940_v44 }
  0x3c   : > { %2405 = vmatmul.mubr.msk.f32.vlgmr.msra.gmra.mrb[0].mxu0 %vm651_vm1, %v2682_v16  ;;  %v623_v16 = vld [vmem:[%s563_s17] sm:$0xff] }
  0x3d   : > { %2341 = vmatmul.mubr.msk.f32.gmra.mrb[4].mxu1 %vm651_vm1, %v943_v49  ;;  %2417 = vmatpush3.msk.msra.mxu0 %vm676_vm0, %v2203_v11 }
  0x3e   : > { %2407 = vmatprep.mubr.msk.f32.mxu0 %vm651_vm1, %v2701_v23  ;;  %2343 = vmatprep.mubr.msk.f32.mxu1 %vm651_vm1, %v946_v51  ;;  %v645_v23 = vld [vmem:[%s2654_s25 + $0x28] sm:$0xff] }
  0x40   : > { %2408 = vmatmul.mubr.msk.f32.gmra.mrb[2].mxu0 %vm651_vm1, %v2711_v27 }
  0x41   : > { %2344 = vmatmul.mubr.msk.f32.gmra.mrb[6].mxu1 %vm651_vm1, %v949_v14  ;;  %2410 = vmatprep.mubr.msk.f32.mxu0 %vm651_vm1, %v2731_v35 }
  0x42   : > { %2348 = vmatprep.mubr.msk.f32.mxu1 %vm651_vm1, %v2644_v4  ;;  %v644_v4 = vld [vmem:[%s2654_s25 + $0x20] sm:$0xff] }
  0x44   : > { %2411 = vmatmul.mubr.msk.f32.gmra.mrb[4].mxu0 %vm651_vm1, %v2740_v41 }
  0x45   : > { %2349 = vmatmul.mubr.msk.f32.vlgmr.msra.gmra.mrb[0].mxu1 %vm651_vm1, %v2657_v6  ;;  %2413 = vmatprep.mubr.msk.f32.mxu0 %vm651_vm1, %v2766_v48  ;;  %v1777_v6 = vrot.slane %v613_v36, 1 }
  0x46   : > { %2431 = vmatpush3.msk.msra.mxu1 %vm676_vm0, %v2619_v1  ;;  %2351 = vmatprep.mubr.msk.f32.mxu1 %vm651_vm1, %v2685_v17  ;;  %v614_v1 = vld [vmem:[%s2831_s13 + $0x8] sm:$0x1] }
  0x47   : > { %v1778_v17 = vrot.slane %v614_v1, 1 }
  0x48   : > { %2414 = vmatmul.mubr.msk.f32.gmra.mrb[6].mxu0 %vm651_vm1, %v623_v16 }
  0x49   : > { %2352 = vmatmul.mubr.msk.f32.gmra.mrb[2].mxu1 %vm651_vm1, %v2705_v25  ;;  %2418 = vmatprep.mubr.msk.f32.mxu0 %vm651_vm1, %v931_v26  ;;  %v646_v25 = vld [vmem:[%s2654_s25 + $0x30] sm:$0xff]  ;;  %v1779_v27 = vsel %vm925_vm2, %v1777_v6, %v1778_v17 }
  0x4a   : > { %2354 = vmatprep.mubr.msk.f32.mxu1 %vm651_vm1, %v2716_v30  ;;  %v647_v30 = vld [vmem:[%s2654_s25 + $0x38] sm:$0xff]  ;;  %s2921_s25 = scalar_lea.vmem %s2956_s8, %s2221_s21 }
  0x4c   : > { %2419 = vmatmul.mubr.msk.f32.vlgmr.msra.gmra.mrb[0].mxu0 %vm651_vm1, %v934_v31 }
  0x4d   : > { %2355 = vmatmul.mubr.msk.f32.gmra.mrb[4].mxu1 %vm651_vm1, %v2735_v38  ;;  %2421 = vmatprep.mubr.msk.f32.mxu0 %vm651_vm1, %v937_v39 }
  0x4e   : > { %2357 = vmatprep.mubr.msk.f32.mxu1 %vm651_vm1, %v2743_v42 }
  0x50   : > { %2422 = vmatmul.mubr.msk.f32.gmra.mrb[2].mxu0 %vm651_vm1, %v940_v44 }
  0x51   : > { %2358 = vmatmul.mubr.msk.f32.gmra.mrb[6].mxu1 %vm651_vm1, %v2771_v52  ;;  %2424 = vmatprep.mubr.msk.f32.mxu0 %vm651_vm1, %v943_v49  ;;  %v2213_v52 = vld [vmem:[%s2955_s7] ss:$0 sm:$0xff] }
  0x52   : > { %2368 = vmatprep.mubr.msk.f32.mxu1 %vm651_vm1, %v644_v4 }
  0x54   : > { %2425 = vmatmul.mubr.msk.f32.gmra.mrb[4].mxu0 %vm651_vm1, %v946_v51 }
  0x55   : > { %2369 = vmatmul.mubr.msk.f32.vlgmr.msra.gmra.mrb[4].mxu1 %vm651_vm1, %v645_v23  ;;  %2427 = vmatprep.mubr.msk.f32.mxu0 %vm651_vm1, %v949_v14 }
  0x56   : > { %2371 = vmatprep.mubr.msk.f32.mxu1 %vm651_vm1, %v646_v25 }
  0x58   : > { %2428 = vmatmul.mubr.msk.f32.gmra.mrb[6].mxu0 %vm651_vm1, %v1779_v27 }
  0x59   : > { %2372 = vmatmul.mubr.msk.f32.gmra.mrb[6].mxu1 %vm651_vm1, %v647_v30 }
 0x118   : > { %v2350_v35 = vpop.f32.mrb[0].mxu1 }
 0x119   : > { %v1179_v38 = vpop.f32.mrb[1].mxu1 }
 0x11c   : > { %v2353_v41 = vpop.f32.mrb[2].mxu1 }
 0x11d   : > { %v1189_v42 = vpop.f32.mrb[3].mxu1 }
 0x11f   : > { %v2420_v48 = vpop.f32.mrb[0].mxu0 }
 0x120   : > { %v2432_v53 = vadd.f32 %v2420_v48, %v2350_v35  ;;  %v1853_v54 = vpop.f32.mrb[1].mxu0 }
 0x121   : > { %v2433_v55 = vadd.f32 %v1853_v54, %v1179_v38 }
 0x122   : > { %v1908_v56 = vadd.f32 %v2432_v53, %v2213_v52 }
 0x123   : > { %v1907_v57 = vadd.f32 %v2433_v55, %v2213_v52  ;;  %v2423_v58 = vpop.f32.mrb[2].mxu0 }
 0x124   : > { %1916 = vst.msk [vmem:[%s2921_s25 + $0x8] sm:$0xff] %vm651_vm1, %v1908_v56  ;;  %v2434_v59 = vadd.f32 %v2423_v58, %v2353_v41  ;;  %v1863_v60 = vpop.f32.mrb[3].mxu0 }
 0x125   : > { %1915 = vst.msk [vmem:[%s2921_s25] sm:$0xff] %vm651_vm1, %v1907_v57  ;;  %v2435_v61 = vadd.f32 %v1863_v60, %v1189_v42 }
 0x126   : > { %v1910_v62 = vadd.f32 %v2434_v59, %v2213_v52 }
 0x127   : > { %v1909_v63 = vadd.f32 %v2435_v61, %v2213_v52  ;;  %v2426_v0 = vpop.f32.mrb[4].mxu0 }
 0x128   : > { %1918 = vst.msk [vmem:[%s2921_s25 + $0x18] sm:$0xff] %vm651_vm1, %v1910_v62  ;;  %v2370_v2 = vpop.f32.mrb[4].mxu1  ;;  %v1873_v3 = vpop.f32.mrb[5].mxu0 }
 0x129   : > { %1917 = vst.msk [vmem:[%s2921_s25 + $0x10] sm:$0xff] %vm651_vm1, %v1909_v63  ;;  %v2436_v5 = vadd.f32 %v2426_v0, %v2370_v2  ;;  %v1341_v7 = vpop.f32.mrb[5].mxu1 }
 0x12a   : > { %v2437_v8 = vadd.f32 %v1873_v3, %v1341_v7 }
 0x12b   : > { %v1912_v9 = vadd.f32 %v2436_v5, %v2213_v52  ;;  %v2429_v10 = vpop.f32.mrb[6].mxu0 }
 0x12c   : > { %v1911_v11 = vadd.f32 %v2437_v8, %v2213_v52  ;;  %v2373_v12 = vpop.f32.mrb[6].mxu1  ;;  %v1883_v13 = vpop.f32.mrb[7].mxu0 }
 0x12d   : > { %1920 = vst.msk [vmem:[%s2921_s25 + $0x28] sm:$0xff] %vm651_vm1, %v1912_v9  ;;  %v2438_v15 = vadd.f32 %v2429_v10, %v2373_v12  ;;  %v1351_v18 = vpop.f32.mrb[7].mxu1 }
 0x12e   : > { %1919 = vst.msk [vmem:[%s2921_s25 + $0x20] sm:$0xff] %vm651_vm1, %v1911_v11  ;;  %v2439_v19 = vadd.f32 %v1883_v13, %v1351_v18 }
 0x12f   : > { %v1914_v20 = vadd.f32 %v2438_v15, %v2213_v52 }
 0x130   : > { %v1913_v21 = vadd.f32 %v2439_v19, %v2213_v52 }
 0x131   : > { %1922 = vst.msk [vmem:[%s2921_s25 + $0x38] sm:$0xff] %vm651_vm1, %v1914_v20 }
 0x132   : > { %1921 = vst.msk [vmem:[%s2921_s25 + $0x30] sm:$0xff] %vm651_vm1, %v1913_v21 }
 0x133 PF: > { %s18_s29 = sadd.s32 1, %s2548_s29   ;;  %s2957_s27 = smov %s2544_s28 }
 0x134   : > { %p15_p5 = scmp.ge.s32.totalorder %s18_s29, 4   ;;  %s2958_s28 = smov %s2960_s30 }
 0x136   :  { %17 = sbr.rel (!%p15_p5) target bundleno = 2 (0x2), region = 105 }

</bundles_post_ra>
